<compile_context>
chip_gen: v7x
topology: tpu7x:2x2x1
jax: 0.10.0
libtpu: 0.0.40
codegen_flags: <defaults>
</compile_context>

<pallas_src>
import functools
import math

import jax
import jax.numpy as jnp
from jax.experimental import pallas as pl
from jax.experimental.pallas import tpu as pltpu


LANE = 128  # lane width; channel axis is padded to a multiple of this


def _round_up(x, m):
    return ((x + m - 1) // m) * m


# ----------------------------------------------------------------------------
# Fused conv stack kernel: one grid step processes a (bt, L, Cp) activation
# tile and runs ALL layers on it while it stays resident in VMEM scratch.
# ----------------------------------------------------------------------------
def _fused_conv_stack_kernel(x_ref, w_ref, b_ref, o_ref, act_a, act_b, *,
                             n_layers, ksize, seq_len, pad_lo, front):
    # x_ref : (bt, L, Cp)                 lane-dense input tile
    # w_ref : (n_layers, K, Cp, Cp)       all layer weights resident in VMEM
    # b_ref : (n_layers, 1, Cp)
    # o_ref : (bt, L, Cp)                 lane-dense output tile
    # act_a/act_b : (bt, front + L + pad_hi, Cp)  ping-pong halo buffers
    bt, _, cp = x_ref.shape
    m = bt * seq_len

    # Zero both buffers once: covers the sequence halos for every layer and
    # the padded channels of the input (padded channels stay zero thereafter
    # because the padded weight rows/cols and biases are zero).
    act_a[...] = jnp.zeros_like(act_a)
    act_b[...] = jnp.zeros_like(act_b)
    # Data lives at sublane-aligned offset `front` (front % 8 == 0) so the
    # inter-layer stores below are unmasked, aligned vst.
    act_a[:, pl.ds(front, seq_len), :] = x_ref[...]

    bufs = (act_a, act_b)
    for layer in range(n_layers):                      # static unroll
        src = bufs[layer % 2]
        dst = bufs[(layer + 1) % 2]

        # im2col: stack the K shifted slabs along the channel (lane) axis so
        # the whole layer is ONE MXU matmul with contraction depth K*Cp and
        # M = bt*L (batch folded into the matmul rows).
        base = front - pad_lo
        slabs = [src[:, pl.ds(base + k, seq_len), :] for k in range(ksize)]
        x2d = jnp.concatenate(slabs, axis=-1).reshape(m, ksize * cp)
        w2d = w_ref[layer].reshape(ksize * cp, cp)

        y = jnp.dot(x2d, w2d, preferred_element_type=jnp.float32)
        y = y + b_ref[layer].astype(jnp.float32)        # (1, Cp) broadcast

        if layer == n_layers - 1:
            o_ref[...] = y.reshape(bt, seq_len, cp).astype(o_ref.dtype)
        else:
            dst[:, pl.ds(front, seq_len), :] = (
                y.reshape(bt, seq_len, cp).astype(dst.dtype))


def fused_conv_stack(x_blc, w_pad, b_pad):
    """x_blc: (B, L, Cp) channel-padded, channels-last activations.
    w_pad: (n_layers, K, Cp, Cp); b_pad: (n_layers, 1, Cp).
    Returns (B, L, Cp)."""
    B, L, Cp = x_blc.shape
    n_layers, K, _, _ = w_pad.shape
    pad_lo = (K - 1) // 2
    pad_hi = K - 1 - pad_lo
    front = _round_up(pad_lo, 8)          # sublane-aligned data offset

    # Fold batch rows into the matmul M dimension: target M ~= 256 rows per
    # MXU call (keeps the f32 accumulator <= ~32 vregs at Cp=128).
    bt = min(B, max(1, 256 // max(L, 1)))
    Bp = _round_up(B, bt)
    if Bp != B:
        x_blc = jnp.pad(x_blc, ((0, Bp - B), (0, 0), (0, 0)))
    grid = (Bp // bt,)
    # TODO(synk): for very long sequences add an L-tile grid axis with an
    # n_layers*(K-1)//2 halo; here L stays whole so the layer stack can be
    # fused with the activation resident in VMEM.

    halo_len = front + L + pad_hi
    kernel = functools.partial(
        _fused_conv_stack_kernel, n_layers=n_layers, ksize=K,
        seq_len=L, pad_lo=pad_lo, front=front)

    out = pl.pallas_call(
        kernel,
        out_shape=jax.ShapeDtypeStruct((Bp, L, Cp), x_blc.dtype),
        grid_spec=pltpu.PrefetchScalarGridSpec(
            num_scalar_prefetch=0,
            grid=grid,
            in_specs=[
                pl.BlockSpec((bt, L, Cp), lambda i: (i, 0, 0)),
                pl.BlockSpec((n_layers, K, Cp, Cp), lambda i: (0, 0, 0, 0)),
                pl.BlockSpec((n_layers, 1, Cp), lambda i: (0, 0, 0)),
            ],
            out_specs=pl.BlockSpec((bt, L, Cp), lambda i: (i, 0, 0)),
            scratch_shapes=[
                pltpu.VMEM((bt, halo_len, Cp), x_blc.dtype),
                pltpu.VMEM((bt, halo_len, Cp), x_blc.dtype),
            ],
        ),
        compiler_params=pltpu.CompilerParams(
            dimension_semantics=("parallel",),   # batch-tile axis: megacore-shardable on v7x
            vmem_limit_bytes=32 * 1024 * 1024,   # explicit, portable to v7x's 64 MiB VMEM
        ),
    )(x_blc, w_pad, b_pad)
    return out[:B]


# ----------------------------------------------------------------------------
# extend_var: pad a (batch, seq) tensor to (batch, ext_len) with fill_value.
# Tail-only writes (copy S columns + fill ext_len-S columns) instead of
# full-fill-then-overwrite.
# ----------------------------------------------------------------------------
def _extend_var_kernel(var_ref, o_ref, *, fill_value):
    B, S = var_ref.shape
    ext_len = o_ref.shape[1]
    o_ref[:, pl.ds(0, S)] = var_ref[...]
    if ext_len > S:
        o_ref[:, pl.ds(S, ext_len - S)] = jnp.full(
            (B, ext_len - S), fill_value, o_ref.dtype)


def extend_var(var, ext_len, fill_value=0):
    B, S = var.shape
    assert ext_len >= S, "extend_var only pads (matches PyTorch semantics)"
    kernel = functools.partial(_extend_var_kernel, fill_value=fill_value)
    return pl.pallas_call(
        kernel,
        out_shape=jax.ShapeDtypeStruct((B, ext_len), var.dtype),
        in_specs=[pl.BlockSpec((B, S), lambda: (0, 0))],
        out_specs=pl.BlockSpec((B, ext_len), lambda: (0, 0)),
    )(var)


# ----------------------------------------------------------------------------
# CNNBase: parameter construction + forward (fused conv stack).
# ----------------------------------------------------------------------------
class CNNBase:
    def __init__(self, hidden_size, n_layers=1, kernel_size=5, dropout=0.3,
                 key=None):
        self.hidden_size = hidden_size
        self.n_layers = n_layers
        self.kernel_size = kernel_size
        self.dropout = dropout
        key = jax.random.PRNGKey(0) if key is None else key

        # PyTorch Conv1d default init: U(-1/sqrt(fan_in), 1/sqrt(fan_in)).
        fan_in = hidden_size * kernel_size
        bound = 1.0 / math.sqrt(fan_in)
        self.params = []
        for _ in range(n_layers):
            kw, kb, key = jax.random.split(key, 3)
            w = jax.random.uniform(
                kw, (kernel_size, hidden_size, hidden_size),
                minval=-bound, maxval=bound, dtype=jnp.float32)
            b = jax.random.uniform(
                kb, (hidden_size,), minval=-bound, maxval=bound,
                dtype=jnp.float32)
            self.params.append((w, b))

        # Pad channels once to a lane-dense multiple of 128 and stack all
        # layers so the kernel holds every layer's weights resident in VMEM.
        C = hidden_size
        Cp = _round_up(C, LANE)
        self.c_pad = Cp
        ws = jnp.stack([w for (w, _) in self.params])          # (nL, K, C, C)
        bs = jnp.stack([b for (_, b) in self.params])          # (nL, C)
        self.w_padded = jnp.pad(
            ws, ((0, 0), (0, 0), (0, Cp - C), (0, Cp - C)))
        self.b_padded = jnp.pad(bs, ((0, 0), (0, Cp - C)))[:, None, :]

    def forward(self, x_ncw):
        """x_ncw: (B, hidden_size, L) NCW, like PyTorch Conv1d input."""
        # TODO(synk): add_module()/forward() are abstract in the original
        # code, so per-layer activation / dropout composition is unspecified;
        # this implements the plain same-padded conv stack (dropout ==
        # identity at inference).
        B, C, L = x_ncw.shape
        Cp = self.c_pad
        # Single edge transpose + channel pad (fused by XLA into one pass);
        # the kernel itself is channels-last and lane-dense end-to-end.
        x = jnp.transpose(x_ncw, (0, 2, 1))
        if Cp != C:
            x = jnp.pad(x, ((0, 0), (0, 0), (0, Cp - C)))
        y = fused_conv_stack(x, self.w_padded, self.b_padded)
        return jnp.transpose(y[:, :, :C], (0, 2, 1))   # back to NCW

    def extend_var(self, var, ext_len, fill_value=0):
        return extend_var(var, ext_len, fill_value)


# ----------------------------------------------------------------------------
# Reference (plain JAX / XLA) conv for verification.
# ----------------------------------------------------------------------------
def _conv1d_ref_ncw(x_ncw, w_kico, b):
    K = w_kico.shape[0]
    pad_lo = (K - 1) // 2
    pad_hi = K - 1 - pad_lo
    w_oiw = jnp.transpose(w_kico, (2, 1, 0))  # (C_out, C_in, K)
    y = jax.lax.conv_general_dilated(
        x_ncw, w_oiw, window_strides=(1,), padding=((pad_lo, pad_hi),),
        dimension_numbers=("NCW", "OIW", "NCW"))
    return y + b[None, :, None]


if __name__ == "__main__":
    B, C, L = 2, 32, 16          # batch, hidden_size (channels), seq length
    n_layers, ksize = 2, 5

    key = jax.random.PRNGKey(0)
    kx, kv, kp = jax.random.split(key, 3)
    x = jax.random.normal(kx, (B, C, L), dtype=jnp.float32)   # NCW
    var = jax.random.normal(kv, (B, L), dtype=jnp.float32)

    model = CNNBase(hidden_size=C, n_layers=n_layers, kernel_size=ksize,
                    key=kp)

    # Fused conv stack (Pallas hot path).
    y = model.forward(x)
    y = jax.block_until_ready(y)

    # extend_var (Pallas, tail-only writes).
    ext = model.extend_var(var, ext_len=24, fill_value=0)
    ext = jax.block_until_ready(ext)

    # Verify against plain-XLA reference.
    y_ref = x
    for (w, b) in model.params:
        y_ref = _conv1d_ref_ncw(y_ref, w, b)
    assert y.shape == (B, C, L)
    assert jnp.allclose(y, y_ref, atol=1e-4, rtol=1e-4)

    ext_ref = jnp.zeros((B, 24), var.dtype).at[:, :L].set(var)
    assert ext.shape == (B, 24)
    assert jnp.allclose(ext, ext_ref)

    print("KERNEL_OK")
</pallas_src>

<mosaic_0001>
module attributes {stable_mosaic.version = 11 : i64} {
  func.func @_fused_conv_stack_kernel(%arg0: i32, %arg1: memref<2x16x128xf32, #tpu.memory_space<vmem>>, %arg2: memref<2x5x128x128xf32, #tpu.memory_space<vmem>>, %arg3: memref<2x1x128xf32, #tpu.memory_space<vmem>>, %arg4: memref<2x16x128xf32, #tpu.memory_space<vmem>>, %arg5: memref<2x26x128xf32, #tpu.memory_space<vmem>>, %arg6: memref<2x26x128xf32, #tpu.memory_space<vmem>>) attributes {dimension_semantics = [#tpu.dimension_semantics<parallel>], iteration_bounds = array<i64: 1>, scalar_prefetch = 0 : i64, scratch_operands = 2 : i64, tpu.core_type = #tpu.core_type<tc>, window_params = [{transform_indices = @transform_0, window_bounds = array<i64: 2, 16, 128>}, {pipeline_mode = #tpu.pipeline_mode<synchronous>, transform_indices = @transform_1, window_bounds = array<i64: 2, 5, 128, 128>}, {pipeline_mode = #tpu.pipeline_mode<synchronous>, transform_indices = @transform_2, window_bounds = array<i64: 2, 1, 128>}, {transform_indices = @transform_3, window_bounds = array<i64: 2, 16, 128>}]} {
    %cst = arith.constant 0.000000e+00 : f32
    %0 = vector.broadcast %cst : f32 to vector<2x26x128xf32>
    %c0 = arith.constant 0 : index
    %c0_0 = arith.constant 0 : index
    %c0_1 = arith.constant 0 : index
    %1 = vector.load %arg5[%c0, %c0_0, %c0_1] : memref<2x26x128xf32, #tpu.memory_space<vmem>>, vector<2x26x128xf32>
    tpu.vector_store %arg5[%c0, %c0_0, %c0_1], %0 {strides = array<i32>} : memref<2x26x128xf32, #tpu.memory_space<vmem>>, vector<2x26x128xf32>,
    %cst_2 = arith.constant 0.000000e+00 : f32
    %2 = vector.broadcast %cst_2 : f32 to vector<2x26x128xf32>
    %c0_3 = arith.constant 0 : index
    %c0_4 = arith.constant 0 : index
    %c0_5 = arith.constant 0 : index
    %3 = vector.load %arg6[%c0_3, %c0_4, %c0_5] : memref<2x26x128xf32, #tpu.memory_space<vmem>>, vector<2x26x128xf32>
    tpu.vector_store %arg6[%c0_3, %c0_4, %c0_5], %2 {strides = array<i32>} : memref<2x26x128xf32, #tpu.memory_space<vmem>>, vector<2x26x128xf32>,
    %c0_6 = arith.constant 0 : index
    %c0_7 = arith.constant 0 : index
    %c0_8 = arith.constant 0 : index
    %4 = vector.load %arg1[%c0_6, %c0_7, %c0_8] : memref<2x16x128xf32, #tpu.memory_space<vmem>>, vector<2x16x128xf32>
    %c0_9 = arith.constant 0 : index
    %c8 = arith.constant 8 : index
    %c0_10 = arith.constant 0 : index
    %5 = vector.load %arg5[%c0_9, %c8, %c0_10] : memref<2x26x128xf32, #tpu.memory_space<vmem>>, vector<2x16x128xf32>
    tpu.vector_store %arg5[%c0_9, %c8, %c0_10], %4 {strides = array<i32>} : memref<2x26x128xf32, #tpu.memory_space<vmem>>, vector<2x16x128xf32>,
    %c0_11 = arith.constant 0 : index
    %c6 = arith.constant 6 : index
    %c0_12 = arith.constant 0 : index
    %6 = vector.load %arg5[%c0_11, %c6, %c0_12] : memref<2x26x128xf32, #tpu.memory_space<vmem>>, vector<2x16x128xf32>
    %c0_13 = arith.constant 0 : index
    %c7 = arith.constant 7 : index
    %c0_14 = arith.constant 0 : index
    %7 = vector.load %arg5[%c0_13, %c7, %c0_14] : memref<2x26x128xf32, #tpu.memory_space<vmem>>, vector<2x16x128xf32>
    %c0_15 = arith.constant 0 : index
    %c8_16 = arith.constant 8 : index
    %c0_17 = arith.constant 0 : index
    %8 = vector.load %arg5[%c0_15, %c8_16, %c0_17] : memref<2x26x128xf32, #tpu.memory_space<vmem>>, vector<2x16x128xf32>
    %c0_18 = arith.constant 0 : index
    %c9 = arith.constant 9 : index
    %c0_19 = arith.constant 0 : index
    %9 = vector.load %arg5[%c0_18, %c9, %c0_19] : memref<2x26x128xf32, #tpu.memory_space<vmem>>, vector<2x16x128xf32>
    %c0_20 = arith.constant 0 : index
    %c10 = arith.constant 10 : index
    %c0_21 = arith.constant 0 : index
    %10 = vector.load %arg5[%c0_20, %c10, %c0_21] : memref<2x26x128xf32, #tpu.memory_space<vmem>>, vector<2x16x128xf32>
    %11 = tpu.concatenate %6, %7, %8, %9, %10 in 2 : vector<2x16x128xf32>, vector<2x16x128xf32>, vector<2x16x128xf32>, vector<2x16x128xf32>, vector<2x16x128xf32> -> vector<2x16x640xf32>
    %12 = vector.shape_cast %11 : vector<2x16x640xf32> to vector<32x640xf32>
    %c0_22 = arith.constant 0 : index
    %c0_23 = arith.constant 0 : index
    %c0_24 = arith.constant 0 : index
    %c0_25 = arith.constant 0 : index
    %13 = vector.load %arg2[%c0_22, %c0_23, %c0_24, %c0_25] : memref<2x5x128x128xf32, #tpu.memory_space<vmem>>, vector<1x5x128x128xf32>
    %14 = vector.shape_cast %13 : vector<1x5x128x128xf32> to vector<5x128x128xf32>
    %15 = vector.shape_cast %14 : vector<5x128x128xf32> to vector<640x128xf32>
    %cst_26 = arith.constant dense<0.000000e+00> : vector<32x128xf32>
    %16 = tpu.matmul %12, %15, %cst_26 {dimension_numbers = #tpu.dot_dimension_numbers<[1], [0], [0], [1], [0, 0, 1, 1], [], []>} : vector<32x640xf32>, vector<640x128xf32>, vector<32x128xf32> -> vector<32x128xf32>
    %c0_27 = arith.constant 0 : index
    %c0_28 = arith.constant 0 : index
    %c0_29 = arith.constant 0 : index
    %17 = vector.load %arg3[%c0_27, %c0_28, %c0_29] : memref<2x1x128xf32, #tpu.memory_space<vmem>>, vector<1x1x128xf32>
    %18 = vector.shape_cast %17 : vector<1x1x128xf32> to vector<1x128xf32>
    %19 = vector.broadcast %18 : vector<1x128xf32> to vector<32x128xf32>
    %20 = arith.addf %16, %19 : vector<32x128xf32>
    %21 = vector.shape_cast %20 : vector<32x128xf32> to vector<2x16x128xf32>
    %c0_30 = arith.constant 0 : index
    %c8_31 = arith.constant 8 : index
    %c0_32 = arith.constant 0 : index
    %22 = vector.load %arg6[%c0_30, %c8_31, %c0_32] : memref<2x26x128xf32, #tpu.memory_space<vmem>>, vector<2x16x128xf32>
    tpu.vector_store %arg6[%c0_30, %c8_31, %c0_32], %21 {strides = array<i32>} : memref<2x26x128xf32, #tpu.memory_space<vmem>>, vector<2x16x128xf32>,
    %c0_33 = arith.constant 0 : index
    %c6_34 = arith.constant 6 : index
    %c0_35 = arith.constant 0 : index
    %23 = vector.load %arg6[%c0_33, %c6_34, %c0_35] : memref<2x26x128xf32, #tpu.memory_space<vmem>>, vector<2x16x128xf32>
    %c0_36 = arith.constant 0 : index
    %c7_37 = arith.constant 7 : index
    %c0_38 = arith.constant 0 : index
    %24 = vector.load %arg6[%c0_36, %c7_37, %c0_38] : memref<2x26x128xf32, #tpu.memory_space<vmem>>, vector<2x16x128xf32>
    %c0_39 = arith.constant 0 : index
    %c8_40 = arith.constant 8 : index
    %c0_41 = arith.constant 0 : index
    %25 = vector.load %arg6[%c0_39, %c8_40, %c0_41] : memref<2x26x128xf32, #tpu.memory_space<vmem>>, vector<2x16x128xf32>
    %c0_42 = arith.constant 0 : index
    %c9_43 = arith.constant 9 : index
    %c0_44 = arith.constant 0 : index
    %26 = vector.load %arg6[%c0_42, %c9_43, %c0_44] : memref<2x26x128xf32, #tpu.memory_space<vmem>>, vector<2x16x128xf32>
    %c0_45 = arith.constant 0 : index
    %c10_46 = arith.constant 10 : index
    %c0_47 = arith.constant 0 : index
    %27 = vector.load %arg6[%c0_45, %c10_46, %c0_47] : memref<2x26x128xf32, #tpu.memory_space<vmem>>, vector<2x16x128xf32>
    %28 = tpu.concatenate %23, %24, %25, %26, %27 in 2 : vector<2x16x128xf32>, vector<2x16x128xf32>, vector<2x16x128xf32>, vector<2x16x128xf32>, vector<2x16x128xf32> -> vector<2x16x640xf32>
    %29 = vector.shape_cast %28 : vector<2x16x640xf32> to vector<32x640xf32>
    %c1 = arith.constant 1 : index
    %c0_48 = arith.constant 0 : index
    %c0_49 = arith.constant 0 : index
    %c0_50 = arith.constant 0 : index
    %30 = vector.load %arg2[%c1, %c0_48, %c0_49, %c0_50] : memref<2x5x128x128xf32, #tpu.memory_space<vmem>>, vector<1x5x128x128xf32>
    %31 = vector.shape_cast %30 : vector<1x5x128x128xf32> to vector<5x128x128xf32>
    %32 = vector.shape_cast %31 : vector<5x128x128xf32> to vector<640x128xf32>
    %cst_51 = arith.constant dense<0.000000e+00> : vector<32x128xf32>
    %33 = tpu.matmul %29, %32, %cst_51 {dimension_numbers = #tpu.dot_dimension_numbers<[1], [0], [0], [1], [0, 0, 1, 1], [], []>} : vector<32x640xf32>, vector<640x128xf32>, vector<32x128xf32> -> vector<32x128xf32>
    %c1_52 = arith.constant 1 : index
    %c0_53 = arith.constant 0 : index
    %c0_54 = arith.constant 0 : index
    %34 = vector.load %arg3[%c1_52, %c0_53, %c0_54] : memref<2x1x128xf32, #tpu.memory_space<vmem>>, vector<1x1x128xf32>
    %35 = vector.shape_cast %34 : vector<1x1x128xf32> to vector<1x128xf32>
    %36 = vector.broadcast %35 : vector<1x128xf32> to vector<32x128xf32>
    %37 = arith.addf %33, %36 : vector<32x128xf32>
    %38 = vector.shape_cast %37 : vector<32x128xf32> to vector<2x16x128xf32>
    %c0_55 = arith.constant 0 : index
    %c0_56 = arith.constant 0 : index
    %c0_57 = arith.constant 0 : index
    %39 = vector.load %arg4[%c0_55, %c0_56, %c0_57] : memref<2x16x128xf32, #tpu.memory_space<vmem>>, vector<2x16x128xf32>
    tpu.vector_store %arg4[%c0_55, %c0_56, %c0_57], %38 {strides = array<i32>} : memref<2x16x128xf32, #tpu.memory_space<vmem>>, vector<2x16x128xf32>,
    return
  }
  func.func @transform_0(%arg0: i32) -> (i32, i32, i32) {
    %c0_i32 = arith.constant 0 : i32
    %c0_i32_0 = arith.constant 0 : i32
    %c0_i32_1 = arith.constant 0 : i32
    return %arg0, %c0_i32, %c0_i32_0 : i32, i32, i32
  }
  func.func @transform_1(%arg0: i32) -> (i32, i32, i32, i32) {
    %c0_i32 = arith.constant 0 : i32
    %c0_i32_0 = arith.constant 0 : i32
    %c0_i32_1 = arith.constant 0 : i32
    %c0_i32_2 = arith.constant 0 : i32
    %c0_i32_3 = arith.constant 0 : i32
    return %c0_i32, %c0_i32_0, %c0_i32_1, %c0_i32_2 : i32, i32, i32, i32
  }
  func.func @transform_2(%arg0: i32) -> (i32, i32, i32) {
    %c0_i32 = arith.constant 0 : i32
    %c0_i32_0 = arith.constant 0 : i32
    %c0_i32_1 = arith.constant 0 : i32
    %c0_i32_2 = arith.constant 0 : i32
    return %c0_i32, %c0_i32_0, %c0_i32_1 : i32, i32, i32
  }
  func.func @transform_3(%arg0: i32) -> (i32, i32, i32) {
    %c0_i32 = arith.constant 0 : i32
    %c0_i32_0 = arith.constant 0 : i32
    %c0_i32_1 = arith.constant 0 : i32
    return %arg0, %c0_i32, %c0_i32_0 : i32, i32, i32
  }
}

</mosaic_0001>

<bundles_post_ra>
// kernel: tpu_custom_call.1
= control target key start
LH: loop header
LB: loop body
LE: loop exit
PB: predicated region body
PF: predicated region fallthrough
CT: control target
= control target key end

     0   :  { %8 = vsyncpa [#allocation5], 0  ;;  %s1461_s0 = inlined_call_operand.hbm [shape: f32[2,16,128], index: 0, kind: input, shape index: {}]   ;;  %s1462_s1 = inlined_call_operand.hbm [shape: f32[2,5,128,128], index: 1, kind: input, shape index: {}]   ;;  %s1463_s2 = inlined_call_operand.vmem [shape: f32[2,1,128], index: 2, kind: input, shape index: {}]   ;;  %s1464_s3 = inlined_call_operand.hbm [shape: f32[2,16,128], index: 3, kind: output, shape index: {}]  }
   0x1   :  { %9 = vsyncpa [#allocation8], 0 }
   0x2   :  { %10 = vsyncpa [#allocation6], 0  ;;  %s1384_s12 = smov [#allocation4]   ;;  %s1312_s16 = scalar_lea.hbm %s1461_s0, 512 }
   0x3   :  { %s16_s13 = sshll.u32 %s1384_s12, 4  ;;  %p1313_p0 = scmp.ne.s32.totalorder %s1461_s0, %s1312_s16  ;;  %s17_s13 = int_to_ptr.vmem [resolvable:$true] %s16_s13 }
   0x4   :  { %p1316_p1 = scmp.lt.u32.totalorder %s1312_s16, %s1461_s0 }
   0x6   :  { %p1318_p2 = pnand %p1316_p1, %p1313_p0 }
   0x8   :  { %1321 = shalt.err (!%p1318_p2)
}
   0x9   :  { %s1322_s21 = scalar_lea.vmem %s17_s13, 512  ;;  %p1327_p4 = scmp.lt.s32.totalorder %s17_s13, %s17_s13 }
   0xa   :  { %p1323_p3 = scmp.ne.s32.totalorder %s17_s13, %s1322_s21  ;;  %p1328_p5 = scmp.lt.s32.totalorder %s1322_s21, %s1322_s21 }
   0xc   :  { %p1329_p6 = por %p1328_p5, %p1327_p4 }
   0xe   :  { %p1330_p7 = pnand %p1329_p6, %p1323_p3 }
  0x10   :  { %1333 = shalt.err (!%p1330_p7)
}
  0x11   :  { %s1385_s22 = smov 128   ;;  %s1386_s23 = smov 8  }
  0x12   :  { %22 = dma.hbm_to_vmem [thread:$0]  %s1461_s0, 512, %s17_s13, [#allocation5], %s1385_s22, %s1385_s22, %s1386_s23  }
  0x13   :  { %s1387_s26 = smov [#allocation7]   ;;  %s1334_s30 = scalar_lea.hbm %s1462_s1, 20480 }
  0x14   :  { %s28_s27 = sshll.u32 %s1387_s26, 4  ;;  %p1335_p8 = scmp.ne.s32.totalorder %s1462_s1, %s1334_s30  ;;  %s29_s27 = int_to_ptr.vmem [resolvable:$true] %s28_s27 }
  0x15   :  { %p1338_p9 = scmp.lt.u32.totalorder %s1334_s30, %s1462_s1 }
  0x17   :  { %p1340_p10 = pnand %p1338_p9, %p1335_p8 }
  0x19   :  { %1343 = shalt.err (!%p1340_p10)
}
  0x1a   :  { %s1344_s8 = scalar_lea.vmem %s29_s27, 20480  ;;  %p1349_p12 = scmp.lt.s32.totalorder %s29_s27, %s29_s27 }
  0x1b   :  { %p1345_p11 = scmp.ne.s32.totalorder %s29_s27, %s1344_s8  ;;  %p1350_p13 = scmp.lt.s32.totalorder %s1344_s8, %s1344_s8 }
  0x1d   :  { %p1351_p0 = por %p1350_p13, %p1349_p12 }
  0x1f   :  { %p1352_p1 = pnand %p1351_p0, %p1345_p11 }
  0x21   :  { %1355 = shalt.err (!%p1352_p1)
}
  0x22   :  { %34 = dma.hbm_to_vmem [thread:$0]  %s1462_s1, 20480, %s29_s27, [#allocation8], %s1385_s22, %s1385_s22, %s1386_s23  }
  0x23   :  { %1378 = dma.done.wait [#allocation5], 512  }
  0x24   :  { %1379 = vsyncadd [#allocation5], 4294966784 }
  0x25   :  { %1380 = dma.done.wait [#allocation8], 20480  }
  0x26   :  { %1381 = vsyncadd [#allocation8], 4294946816  ;;  %v1388_v0 = vmov 0.0   ;;  %v103_v1 = vld [vmem:[#allocation7 + $0x80] sm:$0xff]  ;;  %v104_v2 = vld [vmem:[#allocation7 + $0x88] sm:$0xff] }
  0x27   :  { %43 = vst [vmem:[#allocation2] sm:$0xff] %v1388_v0  ;;  %46 = vst [vmem:[#allocation2 + $0x18] sm:$0x3] %v1388_v0  ;;  %v87_v3 = vld [vmem:[#allocation7] sm:$0xff]  ;;  %v1114_v4 = vpack.c.bf16 %v104_v2, %v103_v1  ;;  %v88_v5 = vld [vmem:[#allocation7 + $0x8] sm:$0xff] }
  0x28   :  { %47 = vst [vmem:[#allocation2 + $0x20] sm:$0xff] %v1388_v0  ;;  %50 = vst [vmem:[#allocation2 + $0x38] sm:$0x3] %v1388_v0  ;;  %v135_v6 = vld [vmem:[#allocation7 + $0x180] sm:$0xff]  ;;  %v136_v7 = vld [vmem:[#allocation7 + $0x188] sm:$0xff]  ;;  %v1116_v8 = vpack.c.bf16 %v88_v5, %v87_v3 }
  0x29   :  { %51 = vst [vmem:[#allocation3] sm:$0xff] %v1388_v0  ;;  %54 = vst [vmem:[#allocation3 + $0x18] sm:$0x3] %v1388_v0  ;;  %v1146_v9 = vpack.c.bf16 %v136_v7, %v135_v6  ;;  %v119_v10 = vld [vmem:[#allocation7 + $0x100] sm:$0xff]  ;;  %v120_v11 = vld [vmem:[#allocation7 + $0x108] sm:$0xff]  ;;  %1115 = vmatprep.subr.bf16.mxu0 %v1114_v4 }
  0x2a   :  { %55 = vst [vmem:[#allocation3 + $0x20] sm:$0xff] %v1388_v0  ;;  %58 = vst [vmem:[#allocation3 + $0x38] sm:$0x3] %v1388_v0  ;;  %v105_v12 = vld [vmem:[#allocation7 + $0x90] sm:$0xff]  ;;  %v1148_v13 = vpack.c.bf16 %v120_v11, %v119_v10  ;;  %v106_v14 = vld [vmem:[#allocation7 + $0x98] sm:$0xff]  ;;  %1117 = vmatpush3.bf16.msra.mxu0 %v1116_v8 }
  0x2b   :  { %v89_v15 = vld [vmem:[#allocation7 + $0x10] sm:$0xff]  ;;  %v90_v16 = vld [vmem:[#allocation7 + $0x18] sm:$0xff]  ;;  %1147 = vmatprep.subr.bf16.mxu1 %v1146_v9  ;;  %v1118_v17 = vpack.c.bf16 %v106_v14, %v105_v12  ;;  %v107_v24 = vld [vmem:[#allocation7 + $0xa0] sm:$0xff] }
  0x2c   :  { %v1120_v18 = vpack.c.bf16 %v90_v16, %v89_v15  ;;  %v137_v19 = vld [vmem:[#allocation7 + $0x190] sm:$0xff]  ;;  %v138_v20 = vld [vmem:[#allocation7 + $0x198] sm:$0xff]  ;;  %1149 = vmatpush3.bf16.msra.mxu1 %v1148_v13  ;;  %v108_v25 = vld [vmem:[#allocation7 + $0xa8] sm:$0xff] }
  0x2d   :  { %v121_v21 = vld [vmem:[#allocation7 + $0x110] sm:$0xff]  ;;  %v1150_v22 = vpack.c.bf16 %v138_v20, %v137_v19  ;;  %v122_v23 = vld [vmem:[#allocation7 + $0x118] sm:$0xff]  ;;  %1119 = vmatprep.subr.bf16.mxu0 %v1118_v17  ;;  %v1122_v27 = vpack.c.bf16 %v108_v25, %v107_v24  ;;  %v91_v28 = vld [vmem:[#allocation7 + $0x20] sm:$0xff] }
  0x2e   :  { %v1152_v26 = vpack.c.bf16 %v122_v23, %v121_v21  ;;  %v92_v29 = vld [vmem:[#allocation7 + $0x28] sm:$0xff]  ;;  %v139_v30 = vld [vmem:[#allocation7 + $0x1a0] sm:$0xff]  ;;  %1121 = vmatpush3.bf16.msra.mxu0 %v1120_v18  ;;  %v109_v36 = vld [vmem:[#allocation7 + $0xb0] sm:$0xff] }
  0x2f   :  { %1151 = vmatprep.subr.bf16.mxu1 %v1150_v22  ;;  %v140_v31 = vld [vmem:[#allocation7 + $0x1a8] sm:$0xff]  ;;  %v123_v32 = vld [vmem:[#allocation7 + $0x120] sm:$0xff]  ;;  %v1124_v34 = vpack.c.bf16 %v92_v29, %v91_v28  ;;  %v110_v37 = vld [vmem:[#allocation7 + $0xb8] sm:$0xff]  ;;  %1123 = vmatprep.subr.bf16.mxu0 %v1122_v27 }
  0x30   :  { %v124_v33 = vld [vmem:[#allocation7 + $0x128] sm:$0xff]  ;;  %v1154_v35 = vpack.c.bf16 %v140_v31, %v139_v30  ;;  %v93_v38 = vld [vmem:[#allocation7 + $0x30] sm:$0xff]  ;;  %1153 = vmatpush3.bf16.msra.mxu1 %v1152_v26  ;;  %v1126_v40 = vpack.c.bf16 %v110_v37, %v109_v36  ;;  %v94_v41 = vld [vmem:[#allocation7 + $0x38] sm:$0xff] }
  0x31   :  { %v1156_v39 = vpack.c.bf16 %v124_v33, %v123_v32  ;;  %v141_v42 = vld [vmem:[#allocation7 + $0x1b0] sm:$0xff]  ;;  %v142_v43 = vld [vmem:[#allocation7 + $0x1b8] sm:$0xff]  ;;  %v111_v47 = vld [vmem:[#allocation7 + $0xc0] sm:$0xff]  ;;  %v1128_v49 = vpack.c.bf16 %v94_v41, %v93_v38 }
  0x32   :  { %1155 = vmatprep.subr.bf16.mxu1 %v1154_v35  ;;  %v1158_v44 = vpack.c.bf16 %v142_v43, %v141_v42  ;;  %v125_v45 = vld [vmem:[#allocation7 + $0x130] sm:$0xff]  ;;  %v126_v46 = vld [vmem:[#allocation7 + $0x138] sm:$0xff]  ;;  %v112_v48 = vld [vmem:[#allocation7 + $0xc8] sm:$0xff]  ;;  %1125 = vmatpush3.bf16.msra.mxu0 %v1124_v34 }
  0x33   :  { %v143_v50 = vld [vmem:[#allocation7 + $0x1c0] sm:$0xff]  ;;  %v144_v51 = vld [vmem:[#allocation7 + $0x1c8] sm:$0xff]  ;;  %1127 = vmatprep.subr.bf16.mxu0 %v1126_v40  ;;  %v1160_v52 = vpack.c.bf16 %v126_v46, %v125_v45  ;;  %v1130_v53 = vpack.c.bf16 %v112_v48, %v111_v47  ;;  %v113_v59 = vld [vmem:[#allocation7 + $0xd0] sm:$0xff] }
  0x34   :  { %1157 = vmatpush3.bf16.msra.mxu1 %v1156_v39  ;;  %v95_v54 = vld [vmem:[#allocation7 + $0x40] sm:$0xff]  ;;  %v96_v55 = vld [vmem:[#allocation7 + $0x48] sm:$0xff]  ;;  %v1162_v57 = vpack.c.bf16 %v144_v51, %v143_v50  ;;  %v114_v60 = vld [vmem:[#allocation7 + $0xd8] sm:$0xff] }
  0x35   :  { %v127_v56 = vld [vmem:[#allocation7 + $0x140] sm:$0xff]  ;;  %1159 = vmatprep.subr.bf16.mxu1 %v1158_v44  ;;  %v128_v58 = vld [vmem:[#allocation7 + $0x148] sm:$0xff]  ;;  %v145_v61 = vld [vmem:[#allocation7 + $0x1d0] sm:$0xff]  ;;  %v1132_v63 = vpack.c.bf16 %v96_v55, %v95_v54  ;;  %v1134_v1 = vpack.c.bf16 %v114_v60, %v113_v59 }
  0x36   :  { %v146_v62 = vld [vmem:[#allocation7 + $0x1d8] sm:$0xff]  ;;  %1129 = vmatpush3.bf16.msra.mxu0 %v1128_v49  ;;  %v1164_v0 = vpack.c.bf16 %v128_v58, %v127_v56  ;;  %v97_v2 = vld [vmem:[#allocation7 + $0x50] sm:$0xff]  ;;  %v115_v7 = vld [vmem:[#allocation7 + $0xe0] sm:$0xff] }
  0x37   :  { %1131 = vmatprep.subr.bf16.mxu0 %v1130_v53  ;;  %v98_v3 = vld [vmem:[#allocation7 + $0x58] sm:$0xff]  ;;  %v129_v4 = vld [vmem:[#allocation7 + $0x150] sm:$0xff]  ;;  %v1166_v5 = vpack.c.bf16 %v146_v62, %v145_v61  ;;  %v116_v8 = vld [vmem:[#allocation7 + $0xe8] sm:$0xff] }
  0x38   :  { %1161 = vmatpush3.bf16.msra.mxu1 %v1160_v52  ;;  %v130_v6 = vld [vmem:[#allocation7 + $0x158] sm:$0xff]  ;;  %v147_v9 = vld [vmem:[#allocation7 + $0x1e0] sm:$0xff]  ;;  %v148_v10 = vld [vmem:[#allocation7 + $0x1e8] sm:$0xff]  ;;  %v1136_v11 = vpack.c.bf16 %v98_v3, %v97_v2  ;;  %v1138_v15 = vpack.c.bf16 %v116_v8, %v115_v7 }
  0x39   :  { %1163 = vmatprep.subr.bf16.mxu1 %v1162_v57  ;;  %v99_v12 = vld [vmem:[#allocation7 + $0x60] sm:$0xff]  ;;  %v1168_v14 = vpack.c.bf16 %v130_v6, %v129_v4  ;;  %v100_v16 = vld [vmem:[#allocation7 + $0x68] sm:$0xff]  ;;  %v1170_v19 = vpack.c.bf16 %v148_v10, %v147_v9  ;;  %v117_v20 = vld [vmem:[#allocation7 + $0xf0] sm:$0xff] }
  0x3a   :  { %1133 = vmatpush3.bf16.msra.mxu0 %v1132_v63  ;;  %v59_v13 = vld [vmem:[#allocation4] sm:$0xff]  ;;  %v132_v18 = vld [vmem:[#allocation7 + $0x168] sm:$0xff]  ;;  %v118_v21 = vld [vmem:[#allocation7 + $0xf8] sm:$0xff]  ;;  %v1140_v25 = vpack.c.bf16 %v100_v16, %v99_v12 }
  0x3b   :  { %1135 = vmatprep.subr.bf16.mxu0 %v1134_v1  ;;  %v131_v17 = vld [vmem:[#allocation7 + $0x160] sm:$0xff]  ;;  %63 = vst [vmem:[#allocation2 + $0x8] sm:$0xff] %v59_v13  ;;  %v60_v22 = vld [vmem:[#allocation4 + $0x8] sm:$0xff]  ;;  %v149_v23 = vld [vmem:[#allocation7 + $0x1f0] sm:$0xff]  ;;  %v1142_v29 = vpack.c.bf16 %v118_v21, %v117_v20 }
  0x3c   :  { %1165 = vmatpush3.bf16.msra.mxu1 %v1164_v0  ;;  %v150_v24 = vld [vmem:[#allocation7 + $0x1f8] sm:$0xff]  ;;  %64 = vst [vmem:[#allocation2 + $0x10] sm:$0xff] %v60_v22  ;;  %v101_v26 = vld [vmem:[#allocation7 + $0x70] sm:$0xff]  ;;  %v1172_v28 = vpack.c.bf16 %v132_v18, %v131_v17  ;;  %v151_v32 = vld [vmem:[#allocation7 + $0x200] sm:$0xff] }
  0x3d   :  { %1167 = vmatprep.subr.bf16.mxu1 %v1166_v5  ;;  %v102_v27 = vld [vmem:[#allocation7 + $0x78] sm:$0xff]  ;;  %v133_v30 = vld [vmem:[#allocation7 + $0x170] sm:$0xff]  ;;  %v1174_v33 = vpack.c.bf16 %v150_v24, %v149_v23  ;;  %v152_v34 = vld [vmem:[#allocation7 + $0x208] sm:$0xff] }
  0x3e   :  { %1137 = vmatpush3.bf16.msra.mxu0 %v1136_v11  ;;  %v134_v31 = vld [vmem:[#allocation7 + $0x178] sm:$0xff]  ;;  %v61_v35 = vld [vmem:[#allocation4 + $0x10] sm:$0xff]  ;;  %v1144_v37 = vpack.c.bf16 %v102_v27, %v101_v26  ;;  %v1178_v40 = vpack.c.bf16 %v152_v34, %v151_v32  ;;  %v155_v46 = vld [vmem:[#allocation7 + $0x220] sm:$0xff] }
  0x3f   :  { %1139 = vmatprep.subr.bf16.mxu0 %v1138_v15  ;;  %v62_v36 = vld [vmem:[#allocation4 + $0x18] sm:$0xff]  ;;  %65 = vst [vmem:[#allocation2 + $0x28] sm:$0xff] %v61_v35  ;;  %v1176_v39 = vpack.c.bf16 %v134_v31, %v133_v30  ;;  %v153_v42 = vld [vmem:[#allocation7 + $0x210] sm:$0xff]  ;;  %v156_v47 = vld [vmem:[#allocation7 + $0x228] sm:$0xff] }
  0x40   :  { %1169 = vmatpush3.bf16.msra.mxu1 %v1168_v14  ;;  %66 = vst [vmem:[#allocation2 + $0x30] sm:$0xff] %v62_v36  ;;  %v154_v43 = vld [vmem:[#allocation7 + $0x218] sm:$0xff]  ;;  %v1186_v51 = vpack.c.bf16 %v156_v47, %v155_v46  ;;  %v157_v52 = vld [vmem:[#allocation7 + $0x230] sm:$0xff]  ;;  %v159_v58 = vld [vmem:[#allocation7 + $0x240] sm:$0xff] }
  0x41   :  { %1171 = vmatprep.subr.bf16.mxu1 %v1170_v19  ;;  %v1182_v45 = vpack.c.bf16 %v154_v43, %v153_v42  ;;  %v158_v53 = vld [vmem:[#allocation7 + $0x238] sm:$0xff]  ;;  %v160_v59 = vld [vmem:[#allocation7 + $0x248] sm:$0xff]  ;;  %v161_v0 = vld [vmem:[#allocation7 + $0x250] sm:$0xff] }
  0x42   :  { %1141 = vmatpush3.bf16.msra.mxu0 %v1140_v25  ;;  %v71_v38 = vld [vmem:[#allocation2 + $0x7] sm:$0xff]  ;;  %v1190_v57 = vpack.c.bf16 %v158_v53, %v157_v52  ;;  %v1194_v63 = vpack.c.bf16 %v160_v59, %v159_v58  ;;  %v162_v1 = vld [vmem:[#allocation7 + $0x258] sm:$0xff]  ;;  %v165_v7 = vld [vmem:[#allocation7 + $0x270] sm:$0xff] }
  0x43   :  { %1143 = vmatprep.subr.bf16.mxu0 %v1142_v29  ;;  %238 = vmatprep.mubr.f32.mxu0 %v71_v38  ;;  %v79_v41 = vld [vmem:[#allocation2 + $0x9] sm:$0xff]  ;;  %v80_v49 = vld [vmem:[#allocation2 + $0x11] sm:$0xff]  ;;  %v1198_v3 = vpack.c.bf16 %v162_v1, %v161_v0  ;;  %v163_v4 = vld [vmem:[#allocation7 + $0x260] sm:$0xff] }
  0x44   :  { %1173 = vmatpush3.bf16.msra.mxu1 %v1172_v28  ;;  %323 = vmatprep.mubr.f32.mxu1 %v79_v41  ;;  %v67_v44 = vld [vmem:[#allocation2 + $0x6] sm:$0xff]  ;;  %v72_v48 = vld [vmem:[#allocation2 + $0xf] sm:$0xff]  ;;  %v166_v8 = vld [vmem:[#allocation7 + $0x278] sm:$0xff] }
  0x45   :  { %1175 = vmatprep.subr.bf16.mxu1 %v1174_v33  ;;  %v68_v50 = vld [vmem:[#allocation2 + $0xe] sm:$0xff]  ;;  %v1206_v9 = vpack.c.bf16 %v166_v8, %v165_v7  ;;  %v454_v15 = vld [vmem:[#allocation7 + $0x280] sm:$0xff]  ;;  %v473_v26 = vld [vmem:[#allocation7 + $0x318] sm:$0xff] }
  0x46   :  { %1145 = vmatpush3.bf16.msra.mxu0 %v1144_v37  ;;  %v73_v54 = vld [vmem:[#allocation2 + $0x27] sm:$0xff]  ;;  %v84_v10 = vld [vmem:[#allocation2 + $0x12] sm:$0xff] }
  0x47   :  { %1179 = vmatprep.subr.bf16.mxu0 %v1178_v40  ;;  %v81_v55 = vld [vmem:[#allocation2 + $0x29] sm:$0xff]  ;;  %v82_v61 = vld [vmem:[#allocation2 + $0x31] sm:$0xff]  ;;  %v502_v18 = vld [vmem:[#allocation7 + $0x400] sm:$0xff] }
  0x48   :  { %1177 = vmatpush3.bf16.msra.mxu1 %v1176_v39  ;;  %v69_v56 = vld [vmem:[#allocation2 + $0x26] sm:$0xff]  ;;  %v74_v60 = vld [vmem:[#allocation2 + $0x2f] sm:$0xff]  ;;  %v457_v28 = vld [vmem:[#allocation7 + $0x298] sm:$0xff] }
  0x49   :  { %239 = vmatmul.mubr.f32.vlgmr.msra.gmra.mrb[0].mxu0 %v67_v44  ;;  %v70_v62 = vld [vmem:[#allocation2 + $0x2e] sm:$0xff]  ;;  %v505_v32 = vld [vmem:[#allocation7 + $0x418] sm:$0xff]  ;;  %v506_v42 = vld [vmem:[#allocation7 + $0x420] sm:$0xff] }
  0x4a   :  { %1181 = vmatpush3.bf16.msra.mxu0 %v1178_v40  ;;  %243 = vmatprep.mubr.f32.mxu0 %v72_v48  ;;  %v83_v2 = vld [vmem:[#allocation2 + $0xa] sm:$0xff]  ;;  %v86_v12 = vld [vmem:[#allocation2 + $0x32] sm:$0xff]  ;;  %v458_v40 = vld [vmem:[#allocation7 + $0x2a0] sm:$0xff] }
  0x4b   :  { %324 = vmatmul.mubr.f32.vlgmr.msra.gmra.mrb[0].mxu1 %v59_v13  ;;  %1183 = vmatprep.subr.bf16.mxu0 %v1182_v45  ;;  %v164_v5 = vld [vmem:[#allocation7 + $0x268] sm:$0xff]  ;;  %v470_v13 = vld [vmem:[#allocation7 + $0x300] sm:$0xff]  ;;  %v472_v24 = vld [vmem:[#allocation7 + $0x310] sm:$0xff] }
  0x4c   :  { %328 = vmatprep.mubr.f32.mxu1 %v80_v49  ;;  %v1202_v6 = vpack.c.bf16 %v164_v5, %v163_v4  ;;  %v85_v11 = vld [vmem:[#allocation2 + $0x2a] sm:$0xff]  ;;  %v1214_v29 = vpack.c.bf16 %v473_v26, %v472_v24  ;;  %v490_v44 = vld [vmem:[#allocation7 + $0x3a0] sm:$0xff]  ;;  %v477_v49 = vld [vmem:[#allocation7 + $0x338] sm:$0xff] }
  0x4d   :  { %244 = vmatmul.mubr.f32.gmra.mrb[2].mxu0 %v68_v50  ;;  %v471_v14 = vld [vmem:[#allocation7 + $0x308] sm:$0xff]  ;;  %v456_v27 = vld [vmem:[#allocation7 + $0x290] sm:$0xff]  ;;  %v461_v53 = vld [vmem:[#allocation7 + $0x2b8] sm:$0xff] }
  0x4e   :  { %1185 = vmatpush3.bf16.msra.mxu0 %v1182_v45  ;;  %248 = vmatprep.mubr.f32.mxu0 %v73_v54  ;;  %v1210_v16 = vpack.c.bf16 %v471_v14, %v470_v13  ;;  %v455_v17 = vld [vmem:[#allocation7 + $0x288] sm:$0xff]  ;;  %v1216_v30 = vpack.c.bf16 %v457_v28, %v456_v27  ;;  %v504_v31 = vld [vmem:[#allocation7 + $0x410] sm:$0xff]  ;;  %v493_v58 = vld [vmem:[#allocation7 + $0x3b8] sm:$0xff] }
  0x4f   :  { %329 = vmatmul.mubr.f32.gmra.mrb[2].mxu1 %v60_v22  ;;  %1187 = vmatprep.subr.bf16.mxu0 %v1186_v51  ;;  %v503_v19 = vld [vmem:[#allocation7 + $0x408] sm:$0xff]  ;;  %v1212_v20 = vpack.c.bf16 %v455_v17, %v454_v15  ;;  %v486_v22 = vld [vmem:[#allocation7 + $0x380] sm:$0xff]  ;;  %v488_v33 = vld [vmem:[#allocation7 + $0x390] sm:$0xff]  ;;  %v1246_v34 = vpack.c.bf16 %v505_v32, %v504_v31 }
  0x50   :  { %333 = vmatprep.mubr.f32.mxu1 %v81_v55  ;;  %v1242_v21 = vpack.c.bf16 %v503_v19, %v502_v18  ;;  %v487_v23 = vld [vmem:[#allocation7 + $0x388] sm:$0xff]  ;;  %1211 = vmatprep.subr.bf16.mxu1 %v1210_v16  ;;  %v476_v48 = vld [vmem:[#allocation7 + $0x330] sm:$0xff]  ;;  %v509_v55 = vld [vmem:[#allocation7 + $0x438] sm:$0xff] }
  0x51   :  { %249 = vmatmul.mubr.f32.gmra.mrb[4].mxu0 %v69_v56  ;;  %v1244_v25 = vpack.c.bf16 %v487_v23, %v486_v22  ;;  %1213 = vmatpush3.bf16.msra.mxu1 %v1212_v20  ;;  %v475_v37 = vld [vmem:[#allocation7 + $0x328] sm:$0xff]  ;;  %v460_v50 = vld [vmem:[#allocation7 + $0x2b0] sm:$0xff]  ;;  %v1222_v52 = vpack.c.bf16 %v477_v49, %v476_v48  ;;  %v494_v5 = vld [vmem:[#allocation7 + $0x3c0] sm:$0xff] }
  0x52   :  { %1189 = vmatpush3.bf16.msra.mxu0 %v1186_v51  ;;  %253 = vmatprep.mubr.f32.mxu0 %v74_v60  ;;  %v459_v41 = vld [vmem:[#allocation7 + $0x2a8] sm:$0xff]  ;;  %v508_v54 = vld [vmem:[#allocation7 + $0x430] sm:$0xff]  ;;  %v1224_v59 = vpack.c.bf16 %v461_v53, %v460_v50  ;;  %v478_v60 = vld [vmem:[#allocation7 + $0x340] sm:$0xff] }
  0x53   :  { %334 = vmatmul.mubr.f32.gmra.mrb[4].mxu1 %v61_v35  ;;  %1191 = vmatprep.subr.bf16.mxu0 %v1190_v57  ;;  %v489_v35 = vld [vmem:[#allocation7 + $0x398] sm:$0xff]  ;;  %v507_v43 = vld [vmem:[#allocation7 + $0x428] sm:$0xff]  ;;  %v1220_v46 = vpack.c.bf16 %v459_v41, %v458_v40  ;;  %v1254_v56 = vpack.c.bf16 %v509_v55, %v508_v54  ;;  %v512_v14 = vld [vmem:[#allocation7 + $0x450] sm:$0xff] }
  0x54   :  { %338 = vmatprep.mubr.f32.mxu1 %v82_v61  ;;  %1215 = vmatprep.subr.bf16.mxu1 %v1214_v29  ;;  %v1248_v38 = vpack.c.bf16 %v489_v35, %v488_v33  ;;  %v491_v45 = vld [vmem:[#allocation7 + $0x3a8] sm:$0xff]  ;;  %v1250_v47 = vpack.c.bf16 %v507_v43, %v506_v42  ;;  %v465_v13 = vld [vmem:[#allocation7 + $0x2d8] sm:$0xff]  ;;  %v496_v17 = vld [vmem:[#allocation7 + $0x3d0] sm:$0xff] }
  0x55   :  { %254 = vmatmul.mubr.f32.gmra.mrb[6].mxu0 %v70_v62  ;;  %1217 = vmatpush3.bf16.msra.mxu1 %v1216_v30  ;;  %v1252_v51 = vpack.c.bf16 %v491_v45, %v490_v44  ;;  %v479_v61 = vld [vmem:[#allocation7 + $0x348] sm:$0xff]  ;;  %v462_v62 = vld [vmem:[#allocation7 + $0x2c0] sm:$0xff]  ;;  %v513_v16 = vld [vmem:[#allocation7 + $0x458] sm:$0xff] }
  0x56   :  { %1193 = vmatpush3.bf16.msra.mxu0 %v1190_v57  ;;  %1070 = vmatprep.mubr.f32.mxu0 %v83_v2  ;;  %v492_v57 = vld [vmem:[#allocation7 + $0x3b0] sm:$0xff]  ;;  %v1226_v0 = vpack.c.bf16 %v479_v61, %v478_v60  ;;  %v463_v1 = vld [vmem:[#allocation7 + $0x2c8] sm:$0xff]  ;;  %v510_v2 = vld [vmem:[#allocation7 + $0x440] sm:$0xff]  ;;  %v1262_v19 = vpack.c.bf16 %v513_v16, %v512_v14 }
  0x57   :  { %339 = vmatmul.mubr.f32.gmra.mrb[6].mxu1 %v62_v36  ;;  %1195 = vmatprep.subr.bf16.mxu0 %v1194_v63  ;;  %v474_v36 = vld [vmem:[#allocation7 + $0x320] sm:$0xff]  ;;  %v1228_v7 = vpack.c.bf16 %v463_v1, %v462_v62  ;;  %v497_v18 = vld [vmem:[#allocation7 + $0x3d8] sm:$0xff]  ;;  %v483_v22 = vld [vmem:[#allocation7 + $0x368] sm:$0xff] }
  0x58   :  { %v1218_v39 = vpack.c.bf16 %v475_v37, %v474_v36  ;;  %v1264_v20 = vpack.c.bf16 %v497_v18, %v496_v17  ;;  %v466_v24 = vld [vmem:[#allocation7 + $0x2e0] sm:$0xff]  ;;  %v515_v28 = vld [vmem:[#allocation7 + $0x468] sm:$0xff]  ;;  %v484_v33 = vld [vmem:[#allocation7 + $0x370] sm:$0xff] }
  0x59   :  { %v514_v26 = vld [vmem:[#allocation7 + $0x460] sm:$0xff]  ;;  %v499_v30 = vld [vmem:[#allocation7 + $0x3e8] sm:$0xff]  ;;  %v468_v36 = vld [vmem:[#allocation7 + $0x2f0] sm:$0xff] }
  0x5a   :  { %1197 = vmatpush3.bf16.msra.mxu0 %v1194_v63  ;;  %1219 = vmatprep.subr.bf16.mxu1 %v1218_v39  ;;  %v1256_v63 = vpack.c.bf16 %v493_v58, %v492_v57  ;;  %v498_v29 = vld [vmem:[#allocation7 + $0x3e0] sm:$0xff]  ;;  %v1266_v31 = vpack.c.bf16 %v515_v28, %v514_v26  ;;  %v469_v37 = vld [vmem:[#allocation7 + $0x2f8] sm:$0xff]  ;;  %v500_v41 = vld [vmem:[#allocation7 + $0x3f0] sm:$0xff] }
  0x5b   :  { %1199 = vmatprep.subr.bf16.mxu0 %v1198_v3  ;;  %1221 = vmatpush3.bf16.msra.mxu1 %v1220_v46  ;;  %v1268_v32 = vpack.c.bf16 %v499_v30, %v498_v29  ;;  %v1240_v39 = vpack.c.bf16 %v469_v37, %v468_v36  ;;  %v517_v40 = vld [vmem:[#allocation7 + $0x478] sm:$0xff]  ;;  %v518_v45 = vld [vmem:[#allocation7 + $0x480] sm:$0xff]  ;;  %v519_v46 = vld [vmem:[#allocation7 + $0x488] sm:$0xff] }
  0x5c   :  { %1223 = vmatprep.subr.bf16.mxu1 %v1222_v52  ;;  %v501_v42 = vld [vmem:[#allocation7 + $0x3f8] sm:$0xff]  ;;  %v819_v49 = vld [vmem:[%s1463_s2] ss:$0 sm:$0xff]  ;;  %v524_v37 = vld [vmem:[#allocation7 + $0x4b0] sm:$0xff] }
  0x5d   :  { %v1272_v44 = vpack.c.bf16 %v501_v42, %v500_v41  ;;  %v521_v26 = vld [vmem:[#allocation7 + $0x498] sm:$0xff] }
  0x5e   :  { %1201 = vmatpush3.bf16.msra.mxu0 %v1198_v3  ;;  %v511_v3 = vld [vmem:[#allocation7 + $0x448] sm:$0xff] }
  0x5f   :  { %1203 = vmatprep.subr.bf16.mxu0 %v1202_v6  ;;  %v1258_v4 = vpack.c.bf16 %v511_v3, %v510_v2  ;;  %1225 = vmatpush3.bf16.msra.mxu1 %v1224_v59 }
  0x60   :  { %1227 = vmatprep.subr.bf16.mxu1 %v1226_v0 }
  0x62   :  { %1205 = vmatpush3.bf16.msra.mxu0 %v1202_v6  ;;  %v495_v6 = vld [vmem:[#allocation7 + $0x3c8] sm:$0xff] }
  0x63   :  { %1207 = vmatprep.subr.bf16.mxu0 %v1206_v9  ;;  %v1260_v8 = vpack.c.bf16 %v495_v6, %v494_v5  ;;  %1229 = vmatpush3.bf16.msra.mxu1 %v1228_v7 }
  0x66   :  { %1209 = vmatpush3.bf16.msra.mxu0 %v1206_v9  ;;  %v480_v9 = vld [vmem:[#allocation7 + $0x350] sm:$0xff] }
  0x67   :  { %1243 = vmatprep.subr.bf16.mxu0 %v1242_v21  ;;  %v482_v21 = vld [vmem:[#allocation7 + $0x360] sm:$0xff] }
  0x68   :  { %v1234_v23 = vpack.c.bf16 %v483_v22, %v482_v21 }
  0x69   :  { %1071 = vmatmul.mubr.f32.vlgmr.msra.gmra.mrb[8].mxu0 %v84_v10  ;;  %v481_v10 = vld [vmem:[#allocation7 + $0x358] sm:$0xff] }
  0x6a   :  { %1073 = vmatprep.mubr.f32.mxu0 %v85_v11  ;;  %1245 = vmatpush3.bf16.msra.mxu0 %v1244_v25  ;;  %v1230_v11 = vpack.c.bf16 %v481_v10, %v480_v9  ;;  %v467_v25 = vld [vmem:[#allocation7 + $0x2e8] sm:$0xff] }
  0x6b   :  { %1247 = vmatprep.subr.bf16.mxu0 %v1246_v34  ;;  %v1236_v27 = vpack.c.bf16 %v467_v25, %v466_v24  ;;  %v485_v34 = vld [vmem:[#allocation7 + $0x378] sm:$0xff]  ;;  %v520_v25 = vld [vmem:[#allocation7 + $0x490] sm:$0xff] }
  0x6c   :  { %1231 = vmatprep.subr.bf16.mxu1 %v1230_v11  ;;  %v1238_v35 = vpack.c.bf16 %v485_v34, %v484_v33  ;;  %v1278_v30 = vpack.c.bf16 %v521_v26, %v520_v25 }
  0x6d   :  { %1074 = vmatmul.mubr.f32.gmra.mrb[10].mxu0 %v86_v12  ;;  %v464_v12 = vld [vmem:[#allocation7 + $0x2d0] sm:$0xff] }
  0x6e   :  { %1249 = vmatpush3.bf16.msra.mxu0 %v1248_v38  ;;  %v1232_v15 = vpack.c.bf16 %v465_v13, %v464_v12  ;;  %v516_v38 = vld [vmem:[#allocation7 + $0x470] sm:$0xff] }
  0x6f   :  { %1251 = vmatprep.subr.bf16.mxu0 %v1250_v47  ;;  %v1270_v43 = vpack.c.bf16 %v517_v40, %v516_v38  ;;  %v1274_v47 = vpack.c.bf16 %v519_v46, %v518_v45  ;;  %v525_v38 = vld [vmem:[#allocation7 + $0x4b8] sm:$0xff] }
  0x70   :  { %1233 = vmatpush3.bf16.msra.mxu1 %v1232_v15  ;;  %v1286_v41 = vpack.c.bf16 %v525_v38, %v524_v37 }
  0x71   :  { %1235 = vmatprep.subr.bf16.mxu1 %v1234_v23 }
  0x72   :  { %1253 = vmatpush3.bf16.msra.mxu0 %v1252_v51 }
  0x73   :  { %1255 = vmatprep.subr.bf16.mxu0 %v1254_v56 }
  0x74   :  { %1237 = vmatpush3.bf16.msra.mxu1 %v1236_v27 }
  0x75   :  { %1239 = vmatprep.subr.bf16.mxu1 %v1238_v35 }
  0x76   :  { %1257 = vmatpush3.bf16.msra.mxu0 %v1256_v63 }
  0x77   :  { %1259 = vmatprep.subr.bf16.mxu0 %v1258_v4 }
  0x78   :  { %1241 = vmatpush3.bf16.msra.mxu1 %v1240_v39 }
  0x79   :  { %1275 = vmatprep.subr.bf16.mxu1 %v1274_v47 }
  0x7a   :  { %1261 = vmatpush3.bf16.msra.mxu0 %v1260_v8 }
  0x7b   :  { %1263 = vmatprep.subr.bf16.mxu0 %v1262_v19 }
  0x7e   :  { %1265 = vmatpush3.bf16.msra.mxu0 %v1264_v20 }
  0x7f   :  { %1267 = vmatprep.subr.bf16.mxu0 %v1266_v31  ;;  %v522_v31 = vld [vmem:[#allocation7 + $0x4a0] sm:$0xff] }
  0x82   :  { %1269 = vmatpush3.bf16.msra.mxu0 %v1268_v32  ;;  %v523_v32 = vld [vmem:[#allocation7 + $0x4a8] sm:$0xff] }
  0x83   :  { %1271 = vmatprep.subr.bf16.mxu0 %v1270_v43  ;;  %v1282_v35 = vpack.c.bf16 %v523_v32, %v522_v31  ;;  %v526_v43 = vld [vmem:[#allocation7 + $0x4c0] sm:$0xff] }
  0x86   :  { %1273 = vmatpush3.bf16.msra.mxu0 %v1272_v44  ;;  %v527_v44 = vld [vmem:[#allocation7 + $0x4c8] sm:$0xff] }
 0x11c   :  { %v854_v48 = vpop.f32.mrb[0].mxu0 }
 0x11d   :  { %v855_v50 = vpop.f32.mrb[1].mxu0 }
 0x11e   :  { %v898_v51 = vpop.f32.mrb[0].mxu1  ;;  %v856_v52 = vadd.f32 %v855_v50, %v854_v48  ;;  %v529_v50 = vld [vmem:[#allocation7 + $0x4d8] sm:$0xff] }
 0x11f   :  { %v899_v53 = vpop.f32.mrb[1].mxu1 }
 0x120   :  { %v900_v54 = vadd.f32 %v899_v53, %v898_v51  ;;  %v241_v55 = vadd.f32 %v856_v52, %v819_v49  ;;  %v857_v56 = vpop.f32.mrb[2].mxu0  ;;  %v530_v53 = vld [vmem:[#allocation7 + $0x4e0] sm:$0xff] }
 0x121   :  { %v858_v57 = vpop.f32.mrb[3].mxu0 }
 0x122   :  { %v901_v58 = vpop.f32.mrb[2].mxu1  ;;  %v859_v59 = vadd.f32 %v858_v57, %v857_v56  ;;  %v326_v61 = vadd.f32 %v900_v54, %v241_v55  ;;  %v531_v54 = vld [vmem:[#allocation7 + $0x4e8] sm:$0xff]  ;;  %v532_v56 = vld [vmem:[#allocation7 + $0x4f0] sm:$0xff]  ;;  %v533_v57 = vld [vmem:[#allocation7 + $0x4f8] sm:$0xff] }
 0x123   :  { %v902_v60 = vpop.f32.mrb[3].mxu1  ;;  %v1298_v55 = vpack.c.bf16 %v531_v54, %v530_v53 }
 0x124   :  { %v903_v62 = vadd.f32 %v902_v60, %v901_v58  ;;  %v246_v63 = vadd.f32 %v859_v59, %v819_v49  ;;  %v860_v0 = vpop.f32.mrb[4].mxu0  ;;  %v1302_v58 = vpack.c.bf16 %v533_v57, %v532_v56 }
 0x125   :  { %v861_v1 = vpop.f32.mrb[5].mxu0 }
 0x126   :  { %v904_v2 = vpop.f32.mrb[4].mxu1  ;;  %v862_v3 = vadd.f32 %v861_v1, %v860_v0  ;;  %v331_v5 = vadd.f32 %v903_v62, %v246_v63  ;;  %v821_v0 = vld [vmem:[%s1463_s2 + $0x1] ss:$0 sm:$0xff]  ;;  %s1389_s2 = smov [#allocation9]  }
 0x127   :  { %v905_v4 = vpop.f32.mrb[5].mxu1  ;;  %s806_s13 = sshll.u32 %s1389_s2, 4  ;;  %s807_s13 = int_to_ptr.vmem [resolvable:$true] %s806_s13 }
 0x128   :  { %v906_v6 = vadd.f32 %v905_v4, %v904_v2  ;;  %v251_v7 = vadd.f32 %v862_v3, %v819_v49  ;;  %v863_v8 = vpop.f32.mrb[6].mxu0  ;;  %s1356_s14 = scalar_lea.vmem %s807_s13, 512  ;;  %p1361_p3 = scmp.lt.s32.totalorder %s807_s13, %s807_s13 }
 0x129   :  { %v864_v9 = vpop.f32.mrb[7].mxu0  ;;  %p1357_p2 = scmp.ne.s32.totalorder %s807_s13, %s1356_s14  ;;  %p1362_p4 = scmp.lt.s32.totalorder %s1356_s14, %s1356_s14 }
 0x12a   :  { %v907_v10 = vpop.f32.mrb[6].mxu1  ;;  %v865_v11 = vadd.f32 %v864_v9, %v863_v8  ;;  %v336_v13 = vadd.f32 %v906_v6, %v251_v7 }
 0x12b   :  { %v908_v12 = vpop.f32.mrb[7].mxu1  ;;  %p1363_p5 = por %p1362_p4, %p1361_p3 }
 0x12c   :  { %v909_v14 = vadd.f32 %v908_v12, %v907_v10  ;;  %v256_v15 = vadd.f32 %v865_v11, %v819_v49  ;;  %v528_v49 = vld [vmem:[#allocation7 + $0x4d0] sm:$0xff] }
 0x12d   :  { %v1294_v52 = vpack.c.bf16 %v529_v50, %v528_v49  ;;  %p1364_p6 = pnand %p1363_p5, %p1357_p2 }
 0x12e   :  { %v341_v16 = vadd.f32 %v909_v14, %v256_v15 }
 0x13c   :  { %v1072_v17 = vpop.f32.mrb[8].mxu0 }
 0x13d   :  { %v416_v18 = vadd.f32 %v1072_v17, %v331_v5  ;;  %v410_v19 = vpop.f32.mrb[9].mxu0 }
 0x13e   :  { %v411_v20 = vadd.f32 %v410_v19, %v326_v61 }
 0x13f   :  { %430 = vst [vmem:[#allocation3 + $0x10] sm:$0xff] %v416_v18 }
 0x140   :  { %429 = vst [vmem:[#allocation3 + $0x8] sm:$0xff] %v411_v20  ;;  %v1075_v21 = vpop.f32.mrb[10].mxu0 }
 0x141   :  { %v426_v22 = vadd.f32 %v1075_v21, %v341_v16  ;;  %v420_v23 = vpop.f32.mrb[11].mxu0 }
 0x142   :  { %v421_v24 = vadd.f32 %v420_v23, %v336_v13 }
 0x143   :  { %432 = vst [vmem:[#allocation3 + $0x30] sm:$0xff] %v426_v22 }
 0x144   :  { %431 = vst [vmem:[#allocation3 + $0x28] sm:$0xff] %v421_v24 }
 0x146   :  { %v446_v34 = vld [vmem:[#allocation3 + $0x11] sm:$0xff] }
 0x147   :  { %v437_v27 = vld [vmem:[#allocation3 + $0x7] sm:$0xff]  ;;  %v438_v33 = vld [vmem:[#allocation3 + $0xf] sm:$0xff] }
 0x148   :  { %v445_v28 = vld [vmem:[#allocation3 + $0x9] sm:$0xff]  ;;  %606 = vmatprep.mubr.f32.mxu1 %v437_v27  ;;  %v450_v59 = vld [vmem:[#allocation3 + $0x12] sm:$0xff] }
 0x149   :  { %v433_v29 = vld [vmem:[#allocation3 + $0x6] sm:$0xff]  ;;  %691 = vmatprep.mubr.f32.mxu0 %v445_v28  ;;  %v434_v36 = vld [vmem:[#allocation3 + $0xe] sm:$0xff] }
 0x14a   :  { %607 = vmatmul.mubr.f32.vlgmr.msra.gmra.mrb[8].mxu1 %v433_v29  ;;  %692 = vmatmul.mubr.f32.vlgmr.msra.gmra.mrb[12].mxu0 %v411_v20  ;;  %v448_v46 = vld [vmem:[#allocation3 + $0x31] sm:$0xff] }
 0x14b   :  { %1277 = vmatpush3.bf16.msra.mxu1 %v1274_v47  ;;  %611 = vmatprep.mubr.f32.mxu1 %v438_v33  ;;  %v439_v39 = vld [vmem:[#allocation3 + $0x27] sm:$0xff]  ;;  %v440_v45 = vld [vmem:[#allocation3 + $0x2f] sm:$0xff]  ;;  %v1290_v47 = vpack.c.bf16 %v527_v44, %v526_v43 }
 0x14c   :  { %696 = vmatprep.mubr.f32.mxu0 %v446_v34  ;;  %1279 = vmatprep.subr.bf16.mxu1 %v1278_v30  ;;  %v447_v40 = vld [vmem:[#allocation3 + $0x29] sm:$0xff]  ;;  %v452_v61 = vld [vmem:[#allocation3 + $0x32] sm:$0xff] }
 0x14d   :  { %v435_v42 = vld [vmem:[#allocation3 + $0x26] sm:$0xff]  ;;  %v436_v48 = vld [vmem:[#allocation3 + $0x2e] sm:$0xff] }
 0x14e   :  { %612 = vmatmul.mubr.f32.gmra.mrb[10].mxu1 %v434_v36  ;;  %697 = vmatmul.mubr.f32.gmra.mrb[14].mxu0 %v416_v18  ;;  %v449_v51 = vld [vmem:[#allocation3 + $0xa] sm:$0xff] }
 0x14f   :  { %1281 = vmatpush3.bf16.msra.mxu1 %v1278_v30  ;;  %616 = vmatprep.mubr.f32.mxu1 %v439_v39  ;;  %v451_v60 = vld [vmem:[#allocation3 + $0x2a] sm:$0xff] }
 0x150   :  { %701 = vmatprep.mubr.f32.mxu0 %v447_v40  ;;  %1283 = vmatprep.subr.bf16.mxu1 %v1282_v35 }
 0x152   :  { %617 = vmatmul.mubr.f32.gmra.mrb[12].mxu1 %v435_v42  ;;  %702 = vmatmul.mubr.f32.gmra.mrb[16].mxu0 %v421_v24 }
 0x153   :  { %1285 = vmatpush3.bf16.msra.mxu1 %v1282_v35  ;;  %621 = vmatprep.mubr.f32.mxu1 %v440_v45 }
 0x154   :  { %706 = vmatprep.mubr.f32.mxu0 %v448_v46  ;;  %1287 = vmatprep.subr.bf16.mxu1 %v1286_v41 }
 0x156   :  { %622 = vmatmul.mubr.f32.gmra.mrb[14].mxu1 %v436_v48  ;;  %707 = vmatmul.mubr.f32.gmra.mrb[18].mxu0 %v426_v22 }
 0x157   :  { %1289 = vmatpush3.bf16.msra.mxu1 %v1286_v41  ;;  %1108 = vmatprep.mubr.f32.mxu1 %v449_v51 }
 0x158   :  { %1291 = vmatprep.subr.bf16.mxu1 %v1290_v47 }
 0x15b   :  { %1293 = vmatpush3.bf16.msra.mxu1 %v1290_v47 }
 0x15c   :  { %1295 = vmatprep.subr.bf16.mxu1 %v1294_v52 }
 0x15f   :  { %1297 = vmatpush3.bf16.msra.mxu1 %v1294_v52 }
 0x160   :  { %1299 = vmatprep.subr.bf16.mxu1 %v1298_v55 }
 0x163   :  { %1301 = vmatpush3.bf16.msra.mxu1 %v1298_v55 }
 0x164   :  { %1303 = vmatprep.subr.bf16.mxu1 %v1302_v58 }
 0x167   :  { %1305 = vmatpush3.bf16.msra.mxu1 %v1302_v58 }
 0x16a   :  { %1109 = vmatmul.mubr.f32.vlgmr.msra.gmra.mrb[16].mxu1 %v450_v59 }
 0x16b   :  { %1111 = vmatprep.mubr.f32.mxu1 %v451_v60 }
 0x16e   :  { %1112 = vmatmul.mubr.f32.gmra.mrb[18].mxu1 %v452_v61 }
 0x21d   :  { %v962_v62 = vpop.f32.mrb[8].mxu1  ;;  %v1006_v63 = vpop.f32.mrb[12].mxu0 }
 0x21e   :  { %v963_v1 = vpop.f32.mrb[9].mxu1  ;;  %v1007_v2 = vpop.f32.mrb[13].mxu0 }
 0x21f   :  { %v964_v3 = vadd.f32 %v963_v1, %v962_v62  ;;  %v1008_v4 = vadd.f32 %v1007_v2, %v1006_v63 }
 0x221   :  { %v609_v5 = vadd.f32 %v964_v3, %v821_v0  ;;  %v965_v6 = vpop.f32.mrb[10].mxu1  ;;  %v1009_v7 = vpop.f32.mrb[14].mxu0 }
 0x222   :  { %v966_v8 = vpop.f32.mrb[11].mxu1  ;;  %v1010_v9 = vpop.f32.mrb[15].mxu0 }
 0x223   :  { %v967_v10 = vadd.f32 %v966_v8, %v965_v6  ;;  %v1011_v11 = vadd.f32 %v1010_v9, %v1009_v7  ;;  %v694_v12 = vadd.f32 %v1008_v4, %v609_v5 }
 0x225   :  { %v614_v13 = vadd.f32 %v967_v10, %v821_v0  ;;  %v968_v14 = vpop.f32.mrb[12].mxu1  ;;  %v1012_v15 = vpop.f32.mrb[16].mxu0 }
 0x226   :  { %v969_v16 = vpop.f32.mrb[13].mxu1  ;;  %v1013_v17 = vpop.f32.mrb[17].mxu0 }
 0x227   :  { %v970_v18 = vadd.f32 %v969_v16, %v968_v14  ;;  %v1014_v19 = vadd.f32 %v1013_v17, %v1012_v15  ;;  %v699_v20 = vadd.f32 %v1011_v11, %v614_v13 }
 0x229   :  { %v619_v21 = vadd.f32 %v970_v18, %v821_v0  ;;  %v971_v22 = vpop.f32.mrb[14].mxu1  ;;  %v1015_v23 = vpop.f32.mrb[18].mxu0 }
 0x22a   :  { %v972_v24 = vpop.f32.mrb[15].mxu1  ;;  %v1016_v25 = vpop.f32.mrb[19].mxu0 }
 0x22b   :  { %v973_v26 = vadd.f32 %v972_v24, %v971_v22  ;;  %v1017_v27 = vadd.f32 %v1016_v25, %v1015_v23  ;;  %v704_v28 = vadd.f32 %v1014_v19, %v619_v21 }
 0x22d   :  { %v624_v29 = vadd.f32 %v973_v26, %v821_v0 }
 0x22f   :  { %v709_v30 = vadd.f32 %v1017_v27, %v624_v29 }
 0x23d   :  { %v1110_v31 = vpop.f32.mrb[16].mxu1 }
 0x23e   :  { %v784_v32 = vadd.f32 %v1110_v31, %v699_v20  ;;  %v778_v33 = vpop.f32.mrb[17].mxu1 }
 0x23f   :  { %v779_v34 = vadd.f32 %v778_v33, %v694_v12 }
 0x240   :  { %798 = vst [vmem:[#allocation9 + $0x8] sm:$0xff] %v784_v32 }
 0x241   :  { %797 = vst [vmem:[#allocation9] sm:$0xff] %v779_v34  ;;  %v1113_v35 = vpop.f32.mrb[18].mxu1 }
 0x242   :  { %v794_v36 = vadd.f32 %v1113_v35, %v709_v30  ;;  %v788_v37 = vpop.f32.mrb[19].mxu1 }
 0x243   :  { %v789_v38 = vadd.f32 %v788_v37, %v704_v28 }
 0x244   :  { %800 = vst [vmem:[#allocation9 + $0x18] sm:$0xff] %v794_v36 }
 0x245   :  { %799 = vst [vmem:[#allocation9 + $0x10] sm:$0xff] %v789_v38 }
 0x246   :  { %1367 = shalt.err (!%p1364_p6)
}
 0x247   :  { %s1368_s17 = scalar_lea.hbm %s1464_s3, 512 }
 0x248   :  { %p1369_p7 = scmp.ne.s32.totalorder %s1464_s3, %s1368_s17  ;;  %p1372_p8 = scmp.lt.u32.totalorder %s1368_s17, %s1464_s3 }
 0x24a   :  { %p1374_p9 = pnand %p1372_p8, %p1369_p7 }
 0x24c   :  { %1377 = shalt.err (!%p1374_p9)
}
 0x24d   :  { %812 = dma.vmem_to_hbm [thread:$0]  %s807_s13, 512, %s1464_s3, [#allocation6], %s1385_s22, %s1385_s22, %s1386_s23  }
 0x24e   :  { %1382 = dma.done.wait [#allocation6], 512  }
 0x24f   :  { %1383 = vsyncadd [#allocation6], 4294966784 }
 0x250   :  { %816 = vsyncpa [#allocation5], 1 }
 0x251   :  { %817 = vsyncpa [#allocation8], 1 }
 0x252   :  { %818 = vsyncpa [#allocation6], 1 }

</bundles_post_ra>
